<compile_context>
chip_gen: v7x
topology: tpu7x:2x2x1
jax: 0.10.0
libtpu: 0.0.40
codegen_flags: <defaults>
</compile_context>

<pallas_src>
import functools

import jax
import jax.numpy as jnp
from jax import lax
from jax.experimental import pallas as pl
from jax.experimental.pallas import tpu as pltpu


def _round_up(x, m):
    return ((x + m - 1) // m) * m


def _hcnn_kernel(obs_ref, ext_ref, init_ref, a_hbm_ref, b_hbm_ref, s_ref,
                 a_vmem, b_vmem, state_ref, dma_sem, *, n_obs, obs_lanes, unroll):
    """One grid point = (batch tile, T chunk) of the sequential recurrence.

    obs_ref  : (T_CHUNK, B_TILE, OBS_LANES) f32   obs shifted by one step (obs[g-1])
    ext_ref  : (T_CHUNK, B_TILE, EXT_PAD)   f32   raw externals ext[g]
    init_ref : (B_TILE, N_HID_P)            f32   s_0 = initial_state + B @ ext_0
    a_hbm_ref: (N_HID_P, N_HID_P)           bf16  A^T in HBM (single-buffered copy)
    b_hbm_ref: (EXT_PAD, N_HID_P)           bf16  B^T in HBM
    s_ref    : (T_CHUNK, B_TILE, N_HID_P)   f32   hidden-state output block
    a_vmem/b_vmem : VMEM scratch holding the weights (copied once per batch tile)
    state_ref: (B_TILE, N_HID_P)            f32   recurrent state carried over chunks
    """
    tc = pl.program_id(1)
    t_chunk = obs_ref.shape[0]
    b_tile = obs_ref.shape[1]
    n_hid_p = state_ref.shape[1]

    @pl.when(tc == 0)
    def _():
        # Single-buffered weight residency + per-batch-tile state init.
        cp_a = pltpu.make_async_copy(a_hbm_ref, a_vmem, dma_sem.at[0])
        cp_b = pltpu.make_async_copy(b_hbm_ref, b_vmem, dma_sem.at[1])
        cp_a.start()
        cp_b.start()
        cp_a.wait()
        cp_b.wait()
        state_ref[...] = init_ref[...]

    a_t = a_vmem[...]          # (n_hid_p, n_hid_p) bf16
    b_t = b_vmem[...]          # (ext_pad, n_hid_p) bf16
    init_val = init_ref[...]
    lane = lax.broadcasted_iota(jnp.int32, (b_tile, obs_lanes), 1)
    obs_mask = lane < n_obs
    first_chunk = tc == 0

    def step(lt, state):
        # Teacher forcing: replace the first n_obs hidden coords with obs[g-1].
        obs_t = obs_ref[lt]
        if obs_lanes == n_hid_p:
            teach = jnp.where(obs_mask, obs_t, state)
        else:
            head = jnp.where(obs_mask, obs_t, state[:, :obs_lanes])
            teach = jnp.concatenate([head, state[:, obs_lanes:]], axis=-1)
        nxt = jnp.dot(jnp.tanh(teach).astype(jnp.bfloat16), a_t,
                      preferred_element_type=jnp.float32)
        nxt = nxt + jnp.dot(ext_ref[lt].astype(jnp.bfloat16), b_t,
                            preferred_element_type=jnp.float32)
        # Global step 0 carries the precomputed initial state (no transition).
        nxt = jnp.where(jnp.logical_and(first_chunk, lt == 0), init_val, nxt)
        s_ref[lt] = nxt
        return nxt

    final = lax.fori_loop(0, t_chunk, step, state_ref[...], unroll=unroll)
    state_ref[...] = final


def hcnn_forward(initial_state, data_window, A_w, B_w, *, n_obs, n_ext_vars,
                 batch_tile=None, t_chunk=None, hid_multiple=128,
                 vmem_budget_bytes=24 << 20, states_time_major=False):
    """Pallas forward pass of LargeSparse_ModelClimate.

    initial_state: (1, n_hid) or (batch, 1, n_hid)
    data_window  : (seq_len, 1, n_obs+n_ext) or (batch, seq_len, 1, n_obs+n_ext)
    A_w          : (n_hid, n_hid)  nn.Linear weight (out, in), already pruned
    B_w          : (n_hid, n_ext)  nn.Linear weight (out, in)
    Returns (Xions, out_clust, s_states) with the PyTorch shapes.
    """
    squeeze = data_window.ndim == 3
    if squeeze:
        data_window = data_window[None]
    data_window = jnp.asarray(data_window, jnp.float32)
    batch, T, _, F = data_window.shape
    n_hid = A_w.shape[0]
    assert F == n_obs + n_ext_vars

    obs = data_window[:, :, 0, :n_obs]          # (batch, T, n_obs)
    ext = data_window[:, :, 0, n_obs:]          # (batch, T, n_ext)

    n_hid_p = _round_up(n_hid, max(hid_multiple, 128))
    batch_p = _round_up(batch, 8)
    obs_lanes = min(n_hid_p, _round_up(n_obs, 128))
    ext_pad = _round_up(n_ext_vars, 16)

    A_w32 = jnp.asarray(A_w, jnp.float32)
    B_w32 = jnp.asarray(B_w, jnp.float32)
    a_t = jnp.zeros((n_hid_p, n_hid_p), jnp.float32).at[:n_hid, :n_hid].set(A_w32.T)
    b_t = jnp.zeros((ext_pad, n_hid_p), jnp.float32).at[:n_ext_vars, :n_hid].set(B_w32.T)
    a_t = a_t.astype(jnp.bfloat16)
    b_t = b_t.astype(jnp.bfloat16)

    # s_0 = initial_state + B @ ext_0 : tiny one-shot f32 GEMM done here so the kernel
    # loop is uniform across chunks.
    init = jnp.broadcast_to(
        jnp.asarray(initial_state, jnp.float32).reshape(-1, n_hid), (batch, n_hid))
    init_eff = init + jnp.dot(ext[:, 0], B_w32.T, preferred_element_type=jnp.float32)
    init_eff = jnp.pad(init_eff, ((0, batch_p - batch), (0, n_hid_p - n_hid)))

    # Time-major (T, batch, lanes) layout; obs shifted so that producing s[g] only
    # needs inputs at time index g (obs[g-1], ext[g]).
    obs_tb = jnp.transpose(obs, (1, 0, 2))
    obs_tb = jnp.pad(obs_tb, ((0, 0), (0, batch_p - batch), (0, obs_lanes - n_obs)))
    obs_shift = jnp.concatenate([jnp.zeros_like(obs_tb[:1]), obs_tb[:-1]], axis=0)
    ext_tb = jnp.transpose(ext, (1, 0, 2))
    ext_tb = jnp.pad(ext_tb, ((0, 0), (0, batch_p - batch), (0, ext_pad - n_ext_vars)))

    # ---- VMEM-aware tile picking ----------------------------------------------
    def est(tcn, bt):
        stream = 2 * tcn * bt * (obs_lanes + ext_pad + n_hid_p) * 4   # double-buffered
        init_b = 2 * bt * n_hid_p * 4
        weights = (n_hid_p + ext_pad) * n_hid_p * 2                   # single-buffered
        state = bt * n_hid_p * 4
        return stream + init_b + weights + state

    def divisors_desc(n):
        return [d for d in range(n, 0, -1) if n % d == 0]

    if batch_tile is None or t_chunk is None:
        bt_cands = [d for d in divisors_desc(batch_p) if d % 8 == 0] or [batch_p]
        if batch_p >= 16:  # keep >=2 parallel grid points (feeds both v7x TCs)
            halved = [d for d in bt_cands if d <= batch_p // 2]
            bt_cands = halved or bt_cands
        tc_cands = divisors_desc(T)
        pick_bt, pick_tc = bt_cands[-1], 1
        found = False
        for bt in (bt_cands if batch_tile is None else [batch_tile]):
            for tcn in (tc_cands if t_chunk is None else [t_chunk]):
                if est(tcn, bt) <= vmem_budget_bytes:
                    pick_bt, pick_tc = bt, tcn
                    found = True
                    break
            if found:
                break
        if batch_tile is None:
            batch_tile = pick_bt
        if t_chunk is None:
            t_chunk = pick_tc

    assert batch_p % batch_tile == 0, "batch_tile must divide the padded batch"
    assert T % t_chunk == 0, "t_chunk must divide seq_len"
    n_btiles = batch_p // batch_tile
    n_tchunks = T // t_chunk
    unroll = max(1, min(8, t_chunk))
    vmem_limit = int(min(max(est(t_chunk, batch_tile) * 5 // 4 + (4 << 20), 32 << 20),
                         100 << 20))

    kernel = functools.partial(_hcnn_kernel, n_obs=n_obs, obs_lanes=obs_lanes,
                               unroll=unroll)

    s_tbh = pl.pallas_call(
        kernel,
        out_shape=jax.ShapeDtypeStruct((T, batch_p, n_hid_p), jnp.float32),
        grid=(n_btiles, n_tchunks),
        in_specs=[
            pl.BlockSpec((t_chunk, batch_tile, obs_lanes), lambda b, c: (c, b, 0)),
            pl.BlockSpec((t_chunk, batch_tile, ext_pad), lambda b, c: (c, b, 0)),
            pl.BlockSpec((batch_tile, n_hid_p), lambda b, c: (b, 0)),
            pl.BlockSpec(memory_space=pl.ANY),    # A^T (bf16, copied once per tile)
            pl.BlockSpec(memory_space=pl.ANY),    # B^T (bf16)
        ],
        out_specs=pl.BlockSpec((t_chunk, batch_tile, n_hid_p), lambda b, c: (c, b, 0)),
        scratch_shapes=[
            pltpu.VMEM((n_hid_p, n_hid_p), jnp.bfloat16),   # A^T single-buffered
            pltpu.VMEM((ext_pad, n_hid_p), jnp.bfloat16),   # B^T single-buffered
            pltpu.VMEM((batch_tile, n_hid_p), jnp.float32),  # carried recurrent state
            pltpu.SemaphoreType.DMA((2,)),
        ],
        compiler_params=pltpu.CompilerParams(
            dimension_semantics=("parallel", "arbitrary"),
            vmem_limit_bytes=vmem_limit),
    )(obs_shift, ext_tb, init_eff, a_t, b_t)

    # Cheap vectorized post-pass (outside the serial recurrence).
    s_tbh = s_tbh[:, :batch, :n_hid]
    Xions = jnp.transpose(s_tbh[..., :n_obs], (1, 0, 2))[:, :, None, :]
    out_clust = Xions - obs[:, :, None, :]
    if states_time_major:
        # TODO(synk): consumers accepting time-major states skip a full HBM round trip.
        s_states = s_tbh[:, :, None, :]
    else:
        s_states = jnp.transpose(s_tbh, (1, 0, 2))[:, :, None, :]

    if squeeze:
        Xions, out_clust, s_states = Xions[0], out_clust[0], s_states[0]
    return Xions, out_clust, s_states


def hcnn_reference(initial_state, data_window, A_w, B_w, *, n_obs, n_ext_vars,
                   matmul_dtype=jnp.float32):
    """Pure-JAX reference mirroring the PyTorch loop.

    matmul_dtype=bfloat16 reproduces the kernel's bf16 MXU operands (f32 accum);
    matmul_dtype=float32 reproduces the original PyTorch f32 semantics.
    """
    data_window = jnp.asarray(data_window, jnp.float32)
    batch, T, _, F = data_window.shape
    n_hid = A_w.shape[0]
    A_T = jnp.asarray(A_w, jnp.float32).T.astype(matmul_dtype)
    B_T = jnp.asarray(B_w, jnp.float32).T.astype(matmul_dtype)
    Ide = jnp.eye(n_obs, n_hid, dtype=jnp.float32)

    def mm(x, w):
        return jnp.dot(x.astype(matmul_dtype), w, preferred_element_type=jnp.float32)

    obs = data_window[:, :, 0, :n_obs]
    ext = data_window[:, :, 0, n_obs:]

    state = (jnp.broadcast_to(
        jnp.asarray(initial_state, jnp.float32).reshape(-1, n_hid), (batch, n_hid))
        + jnp.dot(ext[:, 0], jnp.asarray(B_w, jnp.float32).T,
                  preferred_element_type=jnp.float32))
    S, X, O = [state], [], []
    for t in range(T - 1):
        expectation = state[:, :n_obs]
        X.append(expectation)
        O.append(expectation - obs[:, t])
        teach = state - (expectation - obs[:, t]) @ Ide
        state = mm(jnp.tanh(teach), A_T) + mm(ext[:, t + 1], B_T)
        S.append(state)
    expectation = state[:, :n_obs]
    X.append(expectation)
    O.append(expectation - obs[:, T - 1])
    Xr = jnp.stack(X, axis=1)[:, :, None, :]
    Or = jnp.stack(O, axis=1)[:, :, None, :]
    Sr = jnp.stack(S, axis=1)[:, :, None, :]
    return Xr, Or, Sr


if __name__ == "__main__":
    import numpy as np

    def run_case(name, *, batch, seq_len, n_obs, n_ext, n_hid, pct_zero, t_chunk=None):
        key = jax.random.PRNGKey(0)
        k_a, k_mask, k_b, k_s0, k_data = jax.random.split(key, 5)

        bound_a = 1.0 / jnp.sqrt(n_hid)
        A_w = jax.random.uniform(k_a, (n_hid, n_hid), minval=-bound_a, maxval=bound_a,
                                 dtype=jnp.float32)
        mask = (jax.random.uniform(k_mask, (n_hid, n_hid)) >= pct_zero).astype(jnp.float32)
        A_w = A_w * mask                                      # "LargeSparse" pruned A
        bound_b = 1.0 / jnp.sqrt(n_ext)
        B_w = jax.random.uniform(k_b, (n_hid, n_ext), minval=-bound_b, maxval=bound_b,
                                 dtype=jnp.float32)
        # s0_nature = 'random_': uniform(-0.75, 0.75); train_s0 irrelevant for forward.
        initial_state = jax.random.uniform(k_s0, (batch, 1, n_hid), minval=-0.75,
                                           maxval=0.75, dtype=jnp.float32)
        data = jax.random.normal(k_data, (batch, seq_len, 1, n_obs + n_ext),
                                 dtype=jnp.float32)

        X, O, S = jax.block_until_ready(
            hcnn_forward(initial_state, data, A_w, B_w, n_obs=n_obs, n_ext_vars=n_ext,
                         t_chunk=t_chunk))
        assert X.shape == (batch, seq_len, 1, n_obs)
        assert O.shape == (batch, seq_len, 1, n_obs)
        assert S.shape == (batch, seq_len, 1, n_hid)

        # Tight structural check vs a reference using the same bf16 MXU operands.
        Xm, Om, Sm = hcnn_reference(initial_state, data, A_w, B_w, n_obs=n_obs,
                                    n_ext_vars=n_ext, matmul_dtype=jnp.bfloat16)
        np.testing.assert_allclose(np.asarray(S), np.asarray(Sm), atol=1e-2, rtol=1e-2)
        np.testing.assert_allclose(np.asarray(X), np.asarray(Xm), atol=1e-2, rtol=1e-2)
        np.testing.assert_allclose(np.asarray(O), np.asarray(Om), atol=1e-2, rtol=1e-2)

        # Loose check vs the f32 PyTorch-semantics reference (bf16 rounding only diff).
        Xf, Of, Sf = hcnn_reference(initial_state, data, A_w, B_w, n_obs=n_obs,
                                    n_ext_vars=n_ext, matmul_dtype=jnp.float32)
        np.testing.assert_allclose(np.asarray(S), np.asarray(Sf), atol=5e-2, rtol=5e-2)
        np.testing.assert_allclose(np.asarray(X), np.asarray(Xf), atol=5e-2, rtol=5e-2)
        np.testing.assert_allclose(np.asarray(O), np.asarray(Of), atol=5e-2, rtol=5e-2)

    # Case 1: exercises T-chunking (2 chunks of 4) and the full-width teacher-forcing
    # path (obs_lanes == padded n_hid == 128).
    run_case("small", batch=2, seq_len=8, n_obs=8, n_ext=4, n_hid=32, pct_zero=0.5,
             t_chunk=4)
    # Case 2: exercises batch padding (3 -> 8), n_hid padding (160 -> 256) and the
    # concat teacher-forcing path (obs_lanes=128 < n_hid_p=256).
    run_case("wide", batch=3, seq_len=6, n_obs=10, n_ext=5, n_hid=160, pct_zero=0.5)

    print("KERNEL_OK")
</pallas_src>

<mosaic_0001>
module attributes {stable_mosaic.version = 11 : i64} {
  func.func @_hcnn_kernel(%arg0: i32, %arg1: i32, %arg2: memref<4x8x128xf32, #tpu.memory_space<vmem>>, %arg3: memref<4x8x16xf32, #tpu.memory_space<vmem>>, %arg4: memref<8x128xf32, #tpu.memory_space<vmem>>, %arg5: memref<128x128xbf16, #tpu.memory_space<any>>, %arg6: memref<16x128xbf16, #tpu.memory_space<any>>, %arg7: memref<4x8x128xf32, #tpu.memory_space<vmem>>, %arg8: memref<128x128xbf16, #tpu.memory_space<vmem>>, %arg9: memref<16x128xbf16, #tpu.memory_space<vmem>>, %arg10: memref<8x128xf32, #tpu.memory_space<vmem>>, %arg11: memref<2x!tpu.dma_semaphore, #tpu.memory_space<semaphore_mem>>) attributes {dimension_semantics = [#tpu.dimension_semantics<parallel>, #tpu.dimension_semantics<arbitrary>], iteration_bounds = array<i64: 1, 2>, scalar_prefetch = 0 : i64, scratch_operands = 4 : i64, tpu.core_type = #tpu.core_type<tc>, window_params = [{transform_indices = @transform_0, window_bounds = array<i64: 4, 8, 128>}, {transform_indices = @transform_1, window_bounds = array<i64: 4, 8, 16>}, {transform_indices = @transform_2, window_bounds = array<i64: 8, 128>}, {}, {}, {transform_indices = @transform_5, window_bounds = array<i64: 4, 8, 128>}]} {
    %c0_i32 = arith.constant 0 : i32
    %0 = arith.cmpi eq, %arg1, %c0_i32 : i32
    %1 = arith.extui %0 : i1 to i32
    %c0_i32_0 = arith.constant 0 : i32
    %2 = arith.cmpi ne, %1, %c0_i32_0 : i32
    scf.if %2 {
      %c0_i32_47 = arith.constant 0 : i32
      %92 = tpu.memref_slice %arg11[%c0_i32_47] : memref<2x!tpu.dma_semaphore, #tpu.memory_space<semaphore_mem>> -> memref<1x!tpu.dma_semaphore, #tpu.memory_space<semaphore_mem>>
      %93 = tpu.memref_squeeze %92 : memref<1x!tpu.dma_semaphore, #tpu.memory_space<semaphore_mem>> -> memref<!tpu.dma_semaphore, #tpu.memory_space<semaphore_mem>>
      tpu.enqueue_dma source(%arg5 : memref<128x128xbf16, #tpu.memory_space<any>>) target(%arg8 : memref<128x128xbf16, #tpu.memory_space<vmem>>) target_semaphore(%93 : memref<!tpu.dma_semaphore, #tpu.memory_space<semaphore_mem>>)
      %c1_i32_48 = arith.constant 1 : i32
      %94 = tpu.memref_slice %arg11[%c1_i32_48] : memref<2x!tpu.dma_semaphore, #tpu.memory_space<semaphore_mem>> -> memref<1x!tpu.dma_semaphore, #tpu.memory_space<semaphore_mem>>
      %95 = tpu.memref_squeeze %94 : memref<1x!tpu.dma_semaphore, #tpu.memory_space<semaphore_mem>> -> memref<!tpu.dma_semaphore, #tpu.memory_space<semaphore_mem>>
      tpu.enqueue_dma source(%arg6 : memref<16x128xbf16, #tpu.memory_space<any>>) target(%arg9 : memref<16x128xbf16, #tpu.memory_space<vmem>>) target_semaphore(%95 : memref<!tpu.dma_semaphore, #tpu.memory_space<semaphore_mem>>)
      %c0_i32_49 = arith.constant 0 : i32
      %96 = tpu.memref_slice %arg11[%c0_i32_49] : memref<2x!tpu.dma_semaphore, #tpu.memory_space<semaphore_mem>> -> memref<1x!tpu.dma_semaphore, #tpu.memory_space<semaphore_mem>>
      %97 = tpu.memref_squeeze %96 : memref<1x!tpu.dma_semaphore, #tpu.memory_space<semaphore_mem>> -> memref<!tpu.dma_semaphore, #tpu.memory_space<semaphore_mem>>
      tpu.wait_dma2 semaphore(%97 : memref<!tpu.dma_semaphore, #tpu.memory_space<semaphore_mem>>) src(%arg5 : memref<128x128xbf16, #tpu.memory_space<any>>) dst(%arg8 : memref<128x128xbf16, #tpu.memory_space<vmem>>)
      %c1_i32_50 = arith.constant 1 : i32
      %98 = tpu.memref_slice %arg11[%c1_i32_50] : memref<2x!tpu.dma_semaphore, #tpu.memory_space<semaphore_mem>> -> memref<1x!tpu.dma_semaphore, #tpu.memory_space<semaphore_mem>>
      %99 = tpu.memref_squeeze %98 : memref<1x!tpu.dma_semaphore, #tpu.memory_space<semaphore_mem>> -> memref<!tpu.dma_semaphore, #tpu.memory_space<semaphore_mem>>
      tpu.wait_dma2 semaphore(%99 : memref<!tpu.dma_semaphore, #tpu.memory_space<semaphore_mem>>) src(%arg6 : memref<16x128xbf16, #tpu.memory_space<any>>) dst(%arg9 : memref<16x128xbf16, #tpu.memory_space<vmem>>)
      %c0_51 = arith.constant 0 : index
      %c0_52 = arith.constant 0 : index
      %100 = vector.load %arg4[%c0_51, %c0_52] : memref<8x128xf32, #tpu.memory_space<vmem>>, vector<8x128xf32>
      %c0_53 = arith.constant 0 : index
      %c0_54 = arith.constant 0 : index
      %101 = vector.load %arg10[%c0_53, %c0_54] : memref<8x128xf32, #tpu.memory_space<vmem>>, vector<8x128xf32>
      tpu.vector_store %arg10[%c0_53, %c0_54], %100 {strides = array<i32>} : memref<8x128xf32, #tpu.memory_space<vmem>>, vector<8x128xf32>,
    } else {
    }
    %c0 = arith.constant 0 : index
    %c0_1 = arith.constant 0 : index
    %3 = vector.load %arg8[%c0, %c0_1] : memref<128x128xbf16, #tpu.memory_space<vmem>>, vector<128x128xbf16>
    %c0_2 = arith.constant 0 : index
    %c0_3 = arith.constant 0 : index
    %4 = vector.load %arg9[%c0_2, %c0_3] : memref<16x128xbf16, #tpu.memory_space<vmem>>, vector<16x128xbf16>
    %c0_4 = arith.constant 0 : index
    %c0_5 = arith.constant 0 : index
    %5 = vector.load %arg4[%c0_4, %c0_5] : memref<8x128xf32, #tpu.memory_space<vmem>>, vector<8x128xf32>
    %6 = tpu.iota {dimensions = array<i32: 1>} : vector<8x128xi32>
    %c8_i32 = arith.constant 8 : i32
    %7 = vector.broadcast %c8_i32 : i32 to vector<8x128xi32>
    %8 = arith.cmpi slt, %6, %7 : vector<8x128xi32>
    %c0_i32_6 = arith.constant 0 : i32
    %9 = arith.cmpi eq, %arg1, %c0_i32_6 : i32
    %c0_7 = arith.constant 0 : index
    %c0_8 = arith.constant 0 : index
    %10 = vector.load %arg10[%c0_7, %c0_8] : memref<8x128xf32, #tpu.memory_space<vmem>>, vector<8x128xf32>
    %c0_i32_9 = arith.constant 0 : i32
    %11 = arith.index_cast %c0_i32_9 : i32 to index
    %c0_10 = arith.constant 0 : index
    %c0_11 = arith.constant 0 : index
    %12 = vector.load %arg2[%11, %c0_10, %c0_11] : memref<4x8x128xf32, #tpu.memory_space<vmem>>, vector<1x8x128xf32>
    %13 = vector.shape_cast %12 : vector<1x8x128xf32> to vector<8x128xf32>
    %14 = arith.select %8, %13, %10 : vector<8x128xi1>, vector<8x128xf32>
    %15 = math.tanh %14 : vector<8x128xf32>
    %16 = arith.truncf %15 : vector<8x128xf32> to vector<8x128xbf16>
    %cst = arith.constant dense<0.000000e+00> : vector<8x128xf32>
    %17 = tpu.matmul %16, %3, %cst {dimension_numbers = #tpu.dot_dimension_numbers<[1], [0], [0], [1], [0, 0, 1, 1], [], []>} : vector<8x128xbf16>, vector<128x128xbf16>, vector<8x128xf32> -> vector<8x128xf32>
    %18 = arith.index_cast %c0_i32_9 : i32 to index
    %c0_12 = arith.constant 0 : index
    %c0_13 = arith.constant 0 : index
    %19 = vector.load %arg3[%18, %c0_12, %c0_13] : memref<4x8x16xf32, #tpu.memory_space<vmem>>, vector<1x8x16xf32>
    %20 = vector.shape_cast %19 : vector<1x8x16xf32> to vector<8x16xf32>
    %21 = arith.truncf %20 : vector<8x16xf32> to vector<8x16xbf16>
    %cst_14 = arith.constant dense<0.000000e+00> : vector<8x128xf32>
    %22 = tpu.matmul %21, %4, %cst_14 {dimension_numbers = #tpu.dot_dimension_numbers<[1], [0], [0], [1], [0, 0, 1, 1], [], []>} : vector<8x16xbf16>, vector<16x128xbf16>, vector<8x128xf32> -> vector<8x128xf32>
    %23 = arith.addf %17, %22 : vector<8x128xf32>
    %c0_i32_15 = arith.constant 0 : i32
    %24 = arith.cmpi eq, %c0_i32_9, %c0_i32_15 : i32
    %25 = arith.andi %9, %24 : i1
    %26 = arith.select %25, %5, %23 : vector<8x128xf32>
    %27 = arith.index_cast %c0_i32_9 : i32 to index
    %c0_16 = arith.constant 0 : index
    %c0_17 = arith.constant 0 : index
    %28 = vector.load %arg7[%27, %c0_16, %c0_17] : memref<4x8x128xf32, #tpu.memory_space<vmem>>, vector<1x8x128xf32>
    %29 = vector.shape_cast %28 : vector<1x8x128xf32> to vector<8x128xf32>
    %30 = vector.shape_cast %26 : vector<8x128xf32> to vector<1x8x128xf32>
    tpu.vector_store %arg7[%27, %c0_16, %c0_17], %30 {strides = array<i32>} : memref<4x8x128xf32, #tpu.memory_space<vmem>>, vector<1x8x128xf32>,
    %c1_i32 = arith.constant 1 : i32
    %31 = arith.index_cast %c1_i32 : i32 to index
    %c0_18 = arith.constant 0 : index
    %c0_19 = arith.constant 0 : index
    %32 = vector.load %arg2[%31, %c0_18, %c0_19] : memref<4x8x128xf32, #tpu.memory_space<vmem>>, vector<1x8x128xf32>
    %33 = vector.shape_cast %32 : vector<1x8x128xf32> to vector<8x128xf32>
    %34 = arith.select %8, %33, %26 : vector<8x128xi1>, vector<8x128xf32>
    %35 = math.tanh %34 : vector<8x128xf32>
    %36 = arith.truncf %35 : vector<8x128xf32> to vector<8x128xbf16>
    %cst_20 = arith.constant dense<0.000000e+00> : vector<8x128xf32>
    %37 = tpu.matmul %36, %3, %cst_20 {dimension_numbers = #tpu.dot_dimension_numbers<[1], [0], [0], [1], [0, 0, 1, 1], [], []>} : vector<8x128xbf16>, vector<128x128xbf16>, vector<8x128xf32> -> vector<8x128xf32>
    %38 = arith.index_cast %c1_i32 : i32 to index
    %c0_21 = arith.constant 0 : index
    %c0_22 = arith.constant 0 : index
    %39 = vector.load %arg3[%38, %c0_21, %c0_22] : memref<4x8x16xf32, #tpu.memory_space<vmem>>, vector<1x8x16xf32>
    %40 = vector.shape_cast %39 : vector<1x8x16xf32> to vector<8x16xf32>
    %41 = arith.truncf %40 : vector<8x16xf32> to vector<8x16xbf16>
    %cst_23 = arith.constant dense<0.000000e+00> : vector<8x128xf32>
    %42 = tpu.matmul %41, %4, %cst_23 {dimension_numbers = #tpu.dot_dimension_numbers<[1], [0], [0], [1], [0, 0, 1, 1], [], []>} : vector<8x16xbf16>, vector<16x128xbf16>, vector<8x128xf32> -> vector<8x128xf32>
    %43 = arith.addf %37, %42 : vector<8x128xf32>
    %c0_i32_24 = arith.constant 0 : i32
    %44 = arith.cmpi eq, %c1_i32, %c0_i32_24 : i32
    %45 = arith.andi %9, %44 : i1
    %46 = arith.select %45, %5, %43 : vector<8x128xf32>
    %47 = arith.index_cast %c1_i32 : i32 to index
    %c0_25 = arith.constant 0 : index
    %c0_26 = arith.constant 0 : index
    %48 = vector.load %arg7[%47, %c0_25, %c0_26] : memref<4x8x128xf32, #tpu.memory_space<vmem>>, vector<1x8x128xf32>
    %49 = vector.shape_cast %48 : vector<1x8x128xf32> to vector<8x128xf32>
    %50 = vector.shape_cast %46 : vector<8x128xf32> to vector<1x8x128xf32>
    tpu.vector_store %arg7[%47, %c0_25, %c0_26], %50 {strides = array<i32>} : memref<4x8x128xf32, #tpu.memory_space<vmem>>, vector<1x8x128xf32>,
    %c2_i32 = arith.constant 2 : i32
    %51 = arith.index_cast %c2_i32 : i32 to index
    %c0_27 = arith.constant 0 : index
    %c0_28 = arith.constant 0 : index
    %52 = vector.load %arg2[%51, %c0_27, %c0_28] : memref<4x8x128xf32, #tpu.memory_space<vmem>>, vector<1x8x128xf32>
    %53 = vector.shape_cast %52 : vector<1x8x128xf32> to vector<8x128xf32>
    %54 = arith.select %8, %53, %46 : vector<8x128xi1>, vector<8x128xf32>
    %55 = math.tanh %54 : vector<8x128xf32>
    %56 = arith.truncf %55 : vector<8x128xf32> to vector<8x128xbf16>
    %cst_29 = arith.constant dense<0.000000e+00> : vector<8x128xf32>
    %57 = tpu.matmul %56, %3, %cst_29 {dimension_numbers = #tpu.dot_dimension_numbers<[1], [0], [0], [1], [0, 0, 1, 1], [], []>} : vector<8x128xbf16>, vector<128x128xbf16>, vector<8x128xf32> -> vector<8x128xf32>
    %58 = arith.index_cast %c2_i32 : i32 to index
    %c0_30 = arith.constant 0 : index
    %c0_31 = arith.constant 0 : index
    %59 = vector.load %arg3[%58, %c0_30, %c0_31] : memref<4x8x16xf32, #tpu.memory_space<vmem>>, vector<1x8x16xf32>
    %60 = vector.shape_cast %59 : vector<1x8x16xf32> to vector<8x16xf32>
    %61 = arith.truncf %60 : vector<8x16xf32> to vector<8x16xbf16>
    %cst_32 = arith.constant dense<0.000000e+00> : vector<8x128xf32>
    %62 = tpu.matmul %61, %4, %cst_32 {dimension_numbers = #tpu.dot_dimension_numbers<[1], [0], [0], [1], [0, 0, 1, 1], [], []>} : vector<8x16xbf16>, vector<16x128xbf16>, vector<8x128xf32> -> vector<8x128xf32>
    %63 = arith.addf %57, %62 : vector<8x128xf32>
    %c0_i32_33 = arith.constant 0 : i32
    %64 = arith.cmpi eq, %c2_i32, %c0_i32_33 : i32
    %65 = arith.andi %9, %64 : i1
    %66 = arith.select %65, %5, %63 : vector<8x128xf32>
    %67 = arith.index_cast %c2_i32 : i32 to index
    %c0_34 = arith.constant 0 : index
    %c0_35 = arith.constant 0 : index
    %68 = vector.load %arg7[%67, %c0_34, %c0_35] : memref<4x8x128xf32, #tpu.memory_space<vmem>>, vector<1x8x128xf32>
    %69 = vector.shape_cast %68 : vector<1x8x128xf32> to vector<8x128xf32>
    %70 = vector.shape_cast %66 : vector<8x128xf32> to vector<1x8x128xf32>
    tpu.vector_store %arg7[%67, %c0_34, %c0_35], %70 {strides = array<i32>} : memref<4x8x128xf32, #tpu.memory_space<vmem>>, vector<1x8x128xf32>,
    %c3_i32 = arith.constant 3 : i32
    %71 = arith.index_cast %c3_i32 : i32 to index
    %c0_36 = arith.constant 0 : index
    %c0_37 = arith.constant 0 : index
    %72 = vector.load %arg2[%71, %c0_36, %c0_37] : memref<4x8x128xf32, #tpu.memory_space<vmem>>, vector<1x8x128xf32>
    %73 = vector.shape_cast %72 : vector<1x8x128xf32> to vector<8x128xf32>
    %74 = arith.select %8, %73, %66 : vector<8x128xi1>, vector<8x128xf32>
    %75 = math.tanh %74 : vector<8x128xf32>
    %76 = arith.truncf %75 : vector<8x128xf32> to vector<8x128xbf16>
    %cst_38 = arith.constant dense<0.000000e+00> : vector<8x128xf32>
    %77 = tpu.matmul %76, %3, %cst_38 {dimension_numbers = #tpu.dot_dimension_numbers<[1], [0], [0], [1], [0, 0, 1, 1], [], []>} : vector<8x128xbf16>, vector<128x128xbf16>, vector<8x128xf32> -> vector<8x128xf32>
    %78 = arith.index_cast %c3_i32 : i32 to index
    %c0_39 = arith.constant 0 : index
    %c0_40 = arith.constant 0 : index
    %79 = vector.load %arg3[%78, %c0_39, %c0_40] : memref<4x8x16xf32, #tpu.memory_space<vmem>>, vector<1x8x16xf32>
    %80 = vector.shape_cast %79 : vector<1x8x16xf32> to vector<8x16xf32>
    %81 = arith.truncf %80 : vector<8x16xf32> to vector<8x16xbf16>
    %cst_41 = arith.constant dense<0.000000e+00> : vector<8x128xf32>
    %82 = tpu.matmul %81, %4, %cst_41 {dimension_numbers = #tpu.dot_dimension_numbers<[1], [0], [0], [1], [0, 0, 1, 1], [], []>} : vector<8x16xbf16>, vector<16x128xbf16>, vector<8x128xf32> -> vector<8x128xf32>
    %83 = arith.addf %77, %82 : vector<8x128xf32>
    %c0_i32_42 = arith.constant 0 : i32
    %84 = arith.cmpi eq, %c3_i32, %c0_i32_42 : i32
    %85 = arith.andi %9, %84 : i1
    %86 = arith.select %85, %5, %83 : vector<8x128xf32>
    %87 = arith.index_cast %c3_i32 : i32 to index
    %c0_43 = arith.constant 0 : index
    %c0_44 = arith.constant 0 : index
    %88 = vector.load %arg7[%87, %c0_43, %c0_44] : memref<4x8x128xf32, #tpu.memory_space<vmem>>, vector<1x8x128xf32>
    %89 = vector.shape_cast %88 : vector<1x8x128xf32> to vector<8x128xf32>
    %90 = vector.shape_cast %86 : vector<8x128xf32> to vector<1x8x128xf32>
    tpu.vector_store %arg7[%87, %c0_43, %c0_44], %90 {strides = array<i32>} : memref<4x8x128xf32, #tpu.memory_space<vmem>>, vector<1x8x128xf32>,
    %c4_i32 = arith.constant 4 : i32
    %c0_45 = arith.constant 0 : index
    %c0_46 = arith.constant 0 : index
    %91 = vector.load %arg10[%c0_45, %c0_46] : memref<8x128xf32, #tpu.memory_space<vmem>>, vector<8x128xf32>
    tpu.vector_store %arg10[%c0_45, %c0_46], %86 {strides = array<i32>} : memref<8x128xf32, #tpu.memory_space<vmem>>, vector<8x128xf32>,
    return
  }
  func.func @transform_0(%arg0: i32, %arg1: i32) -> (i32, i32, i32) {
    %c0_i32 = arith.constant 0 : i32
    %c0_i32_0 = arith.constant 0 : i32
    return %arg1, %arg0, %c0_i32 : i32, i32, i32
  }
  func.func @transform_1(%arg0: i32, %arg1: i32) -> (i32, i32, i32) {
    %c0_i32 = arith.constant 0 : i32
    %c0_i32_0 = arith.constant 0 : i32
    return %arg1, %arg0, %c0_i32 : i32, i32, i32
  }
  func.func @transform_2(%arg0: i32, %arg1: i32) -> (i32, i32) {
    %c0_i32 = arith.constant 0 : i32
    %c0_i32_0 = arith.constant 0 : i32
    return %arg0, %c0_i32 : i32, i32
  }
  func.func @transform_5(%arg0: i32, %arg1: i32) -> (i32, i32, i32) {
    %c0_i32 = arith.constant 0 : i32
    %c0_i32_0 = arith.constant 0 : i32
    return %arg1, %arg0, %c0_i32 : i32, i32, i32
  }
}

</mosaic_0001>

<bundles_post_ra>
// kernel: tpu_custom_call.1
= control target key start
LH: loop header
LB: loop body
LE: loop exit
PB: predicated region body
PF: predicated region fallthrough
CT: control target
= control target key end

     0   :  { %s1865_s0 = inlined_call_operand.hbm [shape: f32[8,8,128], index: 0, kind: input, shape index: {}]   ;;  %s1866_s1 = inlined_call_operand.hbm [shape: f32[8,8,16], index: 1, kind: input, shape index: {}]   ;;  %s1867_s2 = inlined_call_operand.hbm [shape: f32[8,128], index: 2, kind: input, shape index: {}]   ;;  %s1868_s3 = inlined_call_operand.hbm [shape: bf16[128,128], index: 3, kind: input, shape index: {}]   ;;  %s1869_s4 = inlined_call_operand.vmem [shape: bf16[16,128], index: 4, kind: input, shape index: {}]   ;;  %s1870_s5 = inlined_call_operand.hbm [shape: f32[8,8,128], index: 5, kind: output, shape index: {}]  }
   0x1   :  { %1878 = sst [smem:[#allocation26_spill]] %s1865_s0 }
   0x2   :  { %1879 = sst [smem:[#allocation27_spill]] %s1867_s2 }
   0x3   :  { %10 = vsyncpa [#allocation7], 0 }
   0x4   :  { %12 = vsyncpa [#allocation7 + $0x1], 0 }
   0x5   :  { %13 = vsyncpa [#allocation10], 0 }
   0x6   :  { %15 = vsyncpa [#allocation10 + $0x1], 0 }
   0x7   :  { %16 = vsyncpa [#allocation8], 0 }
   0x8   :  { %18 = vsyncpa [#allocation8 + $0x1], 0  ;;  %s1432_s18 = smov 0   ;;  %s1434_s19 = smov 0  }
   0x9   :  { %s1436_s20 = smov 0   ;;  %s1438_s21 = smov 0  }
   0xa   :  { %s1440_s22 = smov 0   ;;  %s1442_s23 = smov 0  }
   0xb LB: > { %s1463_s24 = sadd.s32 4294967295, %s1389_s23   ;;  %s889_s25 = sadd.s32 4294967294, %s1389_s23   ;;  %s1389_s23 = sphi %s1442_s23, %s24_s23   ;;  %s1385_s22 = sphi %s1440_s22, %s1909_s22   ;;  %s1381_s21 = sphi %s1438_s21, %s1908_s21   ;;  %s1377_s20 = sphi %s1436_s20, %s1907_s20   ;;  %s1373_s19 = sphi %s1434_s19, %s1906_s19   ;;  %s1369_s18 = sphi %s1432_s18, %s1905_s18  }
   0xc   : > { %p52_p0 = scmp.ne.s32.totalorder %s1377_s20, %s1373_s19  ;;  %p53_p1 = scmp.eq.s32.totalorder %s1389_s23, 0 }
   0xd   : > { %p58_p2 = scmp.ne.s32.totalorder %s1373_s19, %s1369_s18  ;;  %p1871_p3 = scmp.eq.s32.totalorder %s1463_s24, 0 }
   0xe   : > { %p138_p4 = scmp.eq.s32.totalorder %s1463_s24, 1  ;;  %p1474_p5 = por %p53_p1, %p52_p0 }
   0xf   : > { %p144_p6 = scmp.eq.s32.totalorder %s889_s25, 1  ;;  %p1480_p7 = por %p1871_p3, %p58_p2 }
  0x10   : > { %p1484_p8 = por %p138_p4, %p52_p0  ;;  %p890_p10 = scmp.ge.s32.totalorder %s1389_s23, 1 }
  0x11   : > { %s1881_s28 = scalar_select %p1480_p7, 1, 0 }
  0x12   : > { %s1882_s29 = scalar_select %p1484_p8, 1, 0 }
  0x13   : > { %p1488_p9 = por %p144_p6, %p58_p2  ;;  %p151_p11 = scmp.lt.s32.totalorder %s1389_s23, 3 }
  0x14   : > { %s1391_s7 = smov [#allocation11]   ;;  %p1118_p1 = scmp.lt.s32.totalorder %s1389_s23, 2 }
  0x15   : > { %s1883_s30 = scalar_select %p1488_p9, 1, 0 }
  0x16   : > { %p1495_p13 = pnand %p890_p10, %p151_p11  ;;  %s166_s8 = sshll.u32 %s1391_s7, 4  ;;  %s167_s8 = int_to_ptr.vmem [resolvable:$true] %s166_s8 }
  0x17   : > { %p1504_p4 = pnand %p1118_p1, %p1474_p5  ;;  %s33_s11 = sadd.s32 1, %s1385_s22 }
  0x18   : > { %s1884_s6 = scalar_select %p1495_p13, 1, 0 }
  0x19   : > { %p1102_p0 = pneg %p1495_p13  ;;  %p1515_p6 = scmp.ge.s32.totalorder %s33_s11, 2 }
  0x1a   : > { %s1885_s9 = scalar_select %p1504_p4, 1, 0 }
  0x1b   : > { %p1510_p2 = pnand %p1102_p0, %p1871_p3  ;;  %s177_s13 = sand.u32 1, %s1377_s20  }
  0x1c   : > { %s1887_s12 = scalar_select %p1515_p6, 1, 0 }
  0x1d   : > { %s1888_s2 = sld [smem:[#allocation27_spill]]  ;;  %p1187_p10 = pneg %p1510_p2 }
  0x23   : > { %s1185_s16 = scalar_lea.hbm %s1888_s2, 128 }
  0x24   : > { %p1186_p5 = scmp.ne.s32.totalorder %s1888_s2, %s1185_s16  ;;  %p1192_p0 = scmp.lt.u32.totalorder %s1185_s16, %s1888_s2 }
  0x26   : > { %p1188_p11 = pnand %p1187_p10, %p1186_p5 }
  0x28   : > { %p1189_p1 = pneg %p1188_p11 }
  0x2a   : > { %p1194_p12 = pnand %p1192_p0, %p1189_p1 }
  0x2c   : > { %1197 = shalt.err (!%p1194_p12)
}
  0x2d   : > { %s1198_s26 = scalar_lea.vmem %s167_s8, 128  ;;  %p1206_p7 = scmp.lt.s32.totalorder %s167_s8, %s167_s8 }
  0x2e   : > { %p1199_p3 = scmp.ne.s32.totalorder %s167_s8, %s1198_s26  ;;  %p1207_p13 = scmp.lt.s32.totalorder %s1198_s26, %s1198_s26 }
  0x30   : > { %p1201_p9 = pnand %p1199_p3, %p1187_p10  ;;  %p1208_p4 = por %p1207_p13, %p1206_p7 }
  0x32   : > { %p1202_p8 = pneg %p1201_p9 }
  0x34   : > { %p1209_p6 = pnand %p1208_p4, %p1202_p8 }
  0x36   : > { %1212 = shalt.err (!%p1209_p6)
}
  0x37   : > { %1105 = dma.hbm_to_vmem [thread:$0]  (!%p1510_p2), %s1888_s2, 128, %s167_s8, [#allocation10]  }
  0x38   : > { %p1889_p3 = scmp.ne.s32.totalorder %s1887_s12, 0  ;;  %s1540_s26 = sshll.u32 %s177_s13, 5 }
  0x39   : > { %s1876_s16 = sshll.u32 %s1385_s22, 9  ;;  %s1891_s0 = sld [smem:[#allocation26_spill]] }
  0x3a   : > { %s1911_s11 = smov (%p1889_p3, %s33_s11), 0  ;;  %s181_s8 = scalar_lea.vmem [#allocation6], %s1540_s26 }
  0x3b   : > { %1890 = sst [smem:[#allocation24_spill]] %s1911_s11  ;;  %s40_s10 = ssub.s32 %s1385_s22, %s1911_s11 }
  0x3c   : > { %p43_p7 = scmp.eq.s32.totalorder %s40_s10, 0  ;;  %s189_s12 = sshll.u32 %s181_s8, 4  ;;  %s1558_s12 = int_to_ptr.vmem [resolvable:$true] %s189_s12 }
  0x3d   : > { %s1892_s7 = sadd.s32 1, %s1377_s20  ;;  %s1560_s15 = scalar_lea.sflag [#allocation7], %s177_s13 }
  0x3e   : > { %s1556_s14 = scalar_select %p43_p7, %s1377_s20, %s1892_s7  }
  0x3f   : > { %s1550_s27 = scalar_lea.hbm %s1891_s0, %s1876_s16  ;;  %p1894_p9 = scmp.ne.s32.totalorder %s1885_s9, 0 }
  0x40   : > { %1893 = sst [smem:[#allocation25_spill]] %s1556_s14  ;;  %s1213_s10 = scalar_lea.hbm %s1550_s27, 512 }
  0x41   : > { %p1214_p8 = scmp.ne.s32.totalorder %s1550_s27, %s1213_s10  ;;  %p1215_p12 = pneg %p1894_p9 }
  0x42   : > { %s1218_s16 = scalar_lea.hbm %s1891_s0, 1024  ;;  %p1219_p2 = scmp.lt.u32.totalorder %s1550_s27, %s1891_s0 }
  0x43   : > { %p1216_p13 = pnand %p1215_p12, %p1214_p8  ;;  %p1220_p6 = scmp.lt.u32.totalorder %s1218_s16, %s1213_s10 }
  0x44   : > { %p1222_p10 = scmp.lt.u32.totalorder %s1213_s10, %s1550_s27 }
  0x45   : > { %p1217_p4 = pneg %p1216_p13  ;;  %p1221_p5 = por %p1220_p6, %p1219_p2 }
  0x47   : > { %p1223_p11 = por %p1222_p10, %p1221_p5 }
  0x49   : > { %p1224_p1 = pnand %p1223_p11, %p1217_p4 }
  0x4b   : > { %1227 = shalt.err (!%p1224_p1)
}
  0x4c   : > { %s1228_s13 = scalar_lea.vmem %s1558_s12, 512  ;;  %s1392_s7 = smov [#allocation6]  }
  0x4d   : > { %p1229_p0 = scmp.ne.s32.totalorder %s1558_s12, %s1228_s13  ;;  %s1233_s17 = sshll.u32 %s1392_s7, 4  ;;  %s1234_s17 = int_to_ptr.vmem [resolvable:$false] %s1233_s17 }
  0x4e   : > { %s1235_s2 = scalar_lea.vmem %s1234_s17, 1024  ;;  %p1236_p8 = scmp.lt.s32.totalorder %s1558_s12, %s1234_s17 }
  0x4f   : > { %p1231_p3 = pnand %p1229_p0, %p1215_p12  ;;  %p1237_p13 = scmp.lt.s32.totalorder %s1235_s2, %s1228_s13 }
  0x51   : > { %p1232_p7 = pneg %p1231_p3  ;;  %p1238_p2 = por %p1237_p13, %p1236_p8 }
  0x53   : > { %p1239_p6 = pnand %p1238_p2, %p1232_p7 }
  0x55   : > { %1242 = shalt.err (!%p1239_p6)
}
  0x56   : > { %s1393_s16 = smov 128   ;;  %s1394_s10 = smov 8  }
  0x57   : > { %1109 = dma.hbm_to_vmem [thread:$0]  (!%p1894_p9), %s1550_s27, 512, %s1558_s12, %s1560_s15, %s1393_s16, %s1393_s16, %s1394_s10  }
  0x58   : > { %s1895_s25 = sshll.u32 %s1385_s22, 9  ;;  %s203_s17 = scalar_lea.vmem [#allocation9], %s1540_s26 }
  0x59   : > { %s1596_s7 = scalar_lea.hbm %s1866_s1, %s1895_s25  ;;  %s211_s2 = sshll.u32 %s203_s17, 4  ;;  %s1599_s2 = int_to_ptr.vmem [resolvable:$true] %s211_s2 }
  0x5a   : > { %s199_s0 = sand.u32 1, %s1389_s23   ;;  %s1243_s14 = scalar_lea.hbm %s1596_s7, 512 }
  0x5b   : > { %s1602_s11 = scalar_lea.sflag [#allocation10], %s199_s0  ;;  %p1244_p4 = scmp.ne.s32.totalorder %s1596_s7, %s1243_s14 }
  0x5c   : > { %s1248_s15 = scalar_lea.hbm %s1866_s1, 1024  ;;  %p1249_p11 = scmp.lt.u32.totalorder %s1596_s7, %s1866_s1 }
  0x5d   : > { %p1246_p5 = pnand %p1244_p4, %p1215_p12  ;;  %p1250_p1 = scmp.lt.u32.totalorder %s1248_s15, %s1243_s14 }
  0x5e   : > { %p1252_p3 = scmp.lt.u32.totalorder %s1243_s14, %s1596_s7 }
  0x5f   : > { %p1247_p10 = pneg %p1246_p5  ;;  %p1251_p0 = por %p1250_p1, %p1249_p11 }
  0x61   : > { %p1253_p7 = por %p1252_p3, %p1251_p0 }
  0x63   : > { %p1254_p8 = pnand %p1253_p7, %p1247_p10 }
  0x65   : > { %1257 = shalt.err (!%p1254_p8)
}
  0x66   : > { %s1258_s0 = scalar_lea.vmem %s1599_s2, 512  ;;  %s1395_s26 = smov [#allocation9]  }
  0x67   : > { %p1259_p13 = scmp.ne.s32.totalorder %s1599_s2, %s1258_s0  ;;  %s1263_s13 = sshll.u32 %s1395_s26, 4  ;;  %s1264_s13 = int_to_ptr.vmem [resolvable:$false] %s1263_s13 }
  0x68   : > { %s1265_s17 = scalar_lea.vmem %s1264_s13, 1024  ;;  %p1266_p4 = scmp.lt.s32.totalorder %s1599_s2, %s1264_s13 }
  0x69   : > { %p1261_p2 = pnand %p1259_p13, %p1215_p12  ;;  %p1267_p5 = scmp.lt.s32.totalorder %s1265_s17, %s1258_s0 }
  0x6b   : > { %p1262_p6 = pneg %p1261_p2  ;;  %p1268_p11 = por %p1267_p5, %p1266_p4 }
  0x6d   : > { %p1269_p1 = pnand %p1268_p11, %p1262_p6 }
  0x6f   : > { %1272 = shalt.err (!%p1269_p1)
}
  0x70   : > { %1112 = dma.hbm_to_vmem [thread:$0]  (!%p1894_p9), %s1596_s7, 512, %s1599_s2, %s1602_s11, %s1393_s16, %s1393_s16, %s1394_s10  }
  0x71   : > { %p1896_p12 = scmp.ne.s32.totalorder %s1884_s6, 0 }
  0x72   : > { %s1634_s14 = sand.u32 (!%p1896_p12), 1, %s1373_s19   ;;  %p1897_p10 = scmp.ne.s32.totalorder (!%p1896_p12), %s1881_s28, 0 }
  0x73   : > { %223 = sbr.rel (%p1896_p12) target bundleno = 1099 (0x44b), region = 32  ;;  %s900_s27 = sshll.u32 (!%p1896_p12), %s1634_s14, 5 }
  0x74   : > { %s226_s12 = scalar_lea.sflag (!%p1896_p12), [#allocation7], %s1634_s14  ;;  %s1638_s15 = scalar_lea.vmem (!%p1896_p12), [#allocation6], %s900_s27 }
  0x7a   : > { %1348 = dma.done.wait (%p1897_p10), %s226_s12, 512  }
  0x7b   : > { %1350 = vsyncadd (%p1897_p10), %s226_s12, 4294966784  ;;  %s234_s9 = sand.u32 1, %s1463_s24   ;;  %s1645_s11 = scalar_lea.vmem [#allocation9], %s900_s27 }
  0x7c   : > { %s235_s6 = scalar_lea.sflag [#allocation10], %s234_s9 }
  0x7d   : > { %1352 = dma.done.wait (%p1897_p10), %s235_s6, 512  }
  0x7e   : > { %1354 = vsyncadd (%p1897_p10), %s235_s6, 4294966784  ;;  %p1898_p9 = scmp.eq.s32.totalorder %s1463_s24, 0 }
  0x80   : > { %1356 = dma.done.wait (%p1898_p9), [#allocation10], 128   ;;  %p1899_p0 = pmov %p1898_p9 }
  0x81   : > { %p274_p3 = scmp.eq.s32.totalorder %s1381_s21, 0  ;;  %s1656_s16 = scalar_lea.vmem [#allocation12], %s900_s27 }
  0x82   : > { %1358 = vsyncadd (%p1899_p0), [#allocation10], 4294967168  ;;  %p904_p7 = scmp.ne.s32.totalorder %s1381_s21, 0 }
  0x83   : > { %v322_v0 = vld [vmem:[%s1869_s4] sm:$0xff] (!%p904_p7)  ;;  %s1396_s2 = smov (!%p904_p7), [#allocation2]   ;;  %s1273_s24 = scalar_lea.hbm (!%p904_p7), %s1868_s3, 1024 }
  0x84   : > { %277 = sbr.rel (%p904_p7) target bundleno = 155 (0x9b), region = 48  ;;  %s285_s28 = sshll.u32 (!%p904_p7), %s1396_s2, 4  ;;  %323 = vst [vmem:[#allocation3] sm:$0xff] (!%p904_p7), %v322_v0  ;;  %s286_s28 = int_to_ptr.vmem [resolvable:$true] %s285_s28 }
  0x85   : > { %p1274_p8 = scmp.ne.s32.totalorder (!%p904_p7), %s1868_s3, %s1273_s24  ;;  %p1277_p13 = scmp.lt.u32.totalorder (!%p904_p7), %s1273_s24, %s1868_s3 }
  0x87   : > { %p1279_p2 = pnand (!%p904_p7), %p1277_p13, %p1274_p8 }
  0x8b   : > { %1282 = shalt.err (!%p1279_p2)  }
  0x8c   : > { %s1283_s27 = scalar_lea.vmem %s286_s28, 1024  ;;  %p1288_p4 = scmp.lt.s32.totalorder %s286_s28, %s286_s28 }
  0x8d   : > { %p1284_p6 = scmp.ne.s32.totalorder %s286_s28, %s1283_s27  ;;  %p1289_p5 = scmp.lt.s32.totalorder %s1283_s27, %s1283_s27 }
  0x8f   : > { %p1290_p11 = por %p1289_p5, %p1288_p4 }
  0x91   : > { %p1291_p1 = pnand %p1290_p11, %p1284_p6 }
  0x93   : > { %1294 = shalt.err (!%p1291_p1)  }
  0x94   : > { %288 = dma.hbm_to_vmem [thread:$0]  %s1868_s3, 1024, %s286_s28, [#allocation5] }
  0x95   : > { %331 = vsyncadd [#allocation5 + $0x1], 128 }
  0x96   : > { %1359 = dma.done.wait [#allocation5], 1024 }
  0x97   : > { %1360 = vsyncadd [#allocation5], 4294966272 }
  0x98   : > { %1361 = dma.done.wait [#allocation5 + $0x1], 128 }
  0x99   : > { %1362 = vsyncadd [#allocation5 + $0x1], 4294967168  ;;  %v340_v1 = vld [vmem:[#allocation11] sm:$0xff] }
  0x9a   : > { %341 = vst [vmem:[#allocation4] sm:$0xff] %v340_v1 }
  0x9b PF: > { %v1674_v2 = vld [vmem:[#allocation3] sm:$0xff]  ;;  %v360_v3 = vld [vmem:[%s1645_s11] sm:$0xff]  ;;  %v1397_v4 = vmov 0.0   ;;  %vm1398_vm0 = vmmov 0   ;;  %vm362_vm1 = vcmask 130048   ;;  %v907_v7 = vld [vmem:[%s1645_s11 + $0x8] sm:$0xff]  ;;  %v352_v9 = vlaneseq }
  0x9c   : > { %972 = vmatprep.subr.bf16.mxu0 %v1397_v4  ;;  %974 = vmatprep.mubr.msk.bf16.mxu0 %vm1398_vm0, %v1397_v4  ;;  %v361_v5 = vpack.c.bf16 %v360_v3, %v360_v3  ;;  %v1683_v6 = vld [vmem:[#allocation2] sm:$0xff]  ;;  %v458_v8 = vpack.c.bf16 %v907_v7, %v907_v7  ;;  %v1695_v10 = vld [vmem:[#allocation2 + $0x8] sm:$0xff]  ;;  %v1706_v12 = vld [vmem:[#allocation2 + $0x10] sm:$0xff]  ;;  %s446_s6 = scalar_select %p274_p3, 1, 0 }
  0x9d   : > { %973 = vmatpush3.bf16.msra.mxu0 %v1674_v2  ;;  %998 = vmatprep.subr.bf16.mxu1 %v1397_v4  ;;  %v1703_v11 = vand.u32 127, %v352_v9  ;;  %v356_v14 = vld [vmem:[%s1638_s15] sm:$0xff]  ;;  %v1714_v15 = vld [vmem:[#allocation2 + $0x18] sm:$0xff]  ;;  %v1722_v17 = vld [vmem:[#allocation2 + $0x20] sm:$0xff]  ;;  %s746_s10 = sshll.u32 %s1656_s16, 4  ;;  %s732_s28 = scalar_lea.sflag [#allocation8], %s1634_s14  ;;  %s1815_s10 = int_to_ptr.vmem [resolvable:$true] %s746_s10 }
  0x9e   : > { %978 = vmatprep.subr.bf16.mxu0 %v1397_v4  ;;  %999 = vmatpush3.bf16.msra.mxu1 %v1674_v2  ;;  %v1728_v18 = vld [vmem:[#allocation2 + $0x28] sm:$0xff]  ;;  %v1734_v19 = vld [vmem:[#allocation2 + $0x30] sm:$0xff]  ;;  %v1740_v21 = vld [vmem:[#allocation2 + $0x38] sm:$0xff]  ;;  %v447_v25 = vstv %s446_s6  ;;  %s1295_s25 = scalar_lea.vmem %s1815_s10, 512  ;;  %p1900_p10 = scmp.ne.s32.totalorder %s1882_s29, 0 }
  0x9f   : > { %1000 = vmatprep.mubr.msk.bf16.mxu1 %vm1398_vm0, %v1397_v4  ;;  %1004 = vmatprep.subr.bf16.mxu1 %v1397_v4  ;;  %vm354_vm2 = vcmp.lt.s32.totalorder %v1703_v11, 8  ;;  %v911_v23 = vld [vmem:[%s1645_s11 + $0x10] sm:$0xff]  ;;  %v351_v26 = vld [vmem:[#allocation11] sm:$0xff]  ;;  %vm448_vm3 = vcmp.eq.s32.totalorder %v447_v25, 1  ;;  %v906_v27 = vld [vmem:[%s1638_s15 + $0x8] sm:$0xff]  ;;  %p1296_p12 = scmp.ne.s32.totalorder %s1815_s10, %s1295_s25 }
  0xa0   : > { %975 = vmatmul.mubr.msk.bf16.vlgmr.msra.gmra.mrb[0].mxu0 %vm362_vm1, %v361_v5  ;;  %v551_v24 = vpack.c.bf16 %v911_v23, %v911_v23  ;;  %v915_v36 = vld [vmem:[%s1645_s11 + $0x18] sm:$0xff]  ;;  %v910_v38 = vld [vmem:[%s1638_s15 + $0x10] sm:$0xff]  ;;  %s927_s11 = sshll.u32 %s1381_s21, 9  ;;  %s1399_s21 = smov [#allocation12]  }
  0xa1   : > { %979 = vmatpush3.bf16.msra.mxu0 %v1683_v6  ;;  %994 = vmatprep.mubr.msk.bf16.mxu0 %vm1398_vm0, %v1397_v4  ;;  %v355_v13 = vld [vmem:[#allocation4] sm:$0xff]  ;;  %v644_v37 = vpack.c.bf16 %v915_v36, %v915_v36  ;;  %p1297_p9 = pnand %p1296_p12, %p1900_p10  ;;  %s1299_s8 = sshll.u32 %s1399_s21, 4  ;;  %s1300_s8 = int_to_ptr.vmem [resolvable:$false] %s1299_s8 }
  0xa2   : > { %980 = vmatprep.subr.bf16.mxu0 %v1397_v4  ;;  %1001 = vmatmul.mubr.msk.bf16.vlgmr.msra.gmra.mrb[0].mxu1 %vm362_vm1, %v458_v8  ;;  %v357_v16 = vsel %vm354_vm2, %v356_v14, %v355_v13  ;;  %v914_v46 = vld [vmem:[%s1638_s15 + $0x18] sm:$0xff]  ;;  %s1813_s15 = scalar_lea.hbm %s1870_s5, %s927_s11  ;;  %s1301_s24 = scalar_lea.vmem %s1300_s8, 1024 }
  0xa3   : > { %1005 = vmatpush3.bf16.msra.mxu1 %v1683_v6  ;;  %1020 = vmatprep.mubr.msk.bf16.mxu1 %vm1398_vm0, %v1397_v4  ;;  %1177 = vtanh.f32 %v357_v16  ;;  %p1298_p0 = pneg %p1297_p9  ;;  %p1302_p3 = scmp.lt.s32.totalorder %s1815_s10, %s1300_s8 }
  0xa4   : > { %1006 = vmatprep.subr.bf16.mxu1 %v1397_v4  ;;  %p1303_p7 = scmp.lt.s32.totalorder %s1301_s24, %s1295_s25 }
  0xa5   : > { %981 = vmatpush3.bf16.msra.mxu0 %v1695_v10 }
  0xa6   : > { %982 = vmatprep.subr.bf16.mxu0 %v1397_v4  ;;  %p1304_p8 = por %p1303_p7, %p1302_p3 }
  0xa7   : > { %1007 = vmatpush3.bf16.msra.mxu1 %v1695_v10 }
  0xa8   : > { %1008 = vmatprep.subr.bf16.mxu1 %v1397_v4  ;;  %p1305_p13 = pnand %p1304_p8, %p1298_p0 }
  0xa9   : > { %983 = vmatpush3.bf16.msra.mxu0 %v1706_v12 }
  0xaa   : > { %984 = vmatprep.subr.bf16.mxu0 %v1397_v4 }
  0xab   : > { %1009 = vmatpush3.bf16.msra.mxu1 %v1706_v12 }
  0xac   : > { %1010 = vmatprep.subr.bf16.mxu1 %v1397_v4 }
  0xad   : > { %985 = vmatpush3.bf16.msra.mxu0 %v1714_v15  ;;  %v1178_v20 = vpop.eup %1177 }
  0xae   : > { %986 = vmatprep.subr.bf16.mxu0 %v1397_v4  ;;  %v359_v22 = vpack.c.bf16 %v1178_v20, %v1178_v20 }
  0xaf   : > { %1011 = vmatpush3.bf16.msra.mxu1 %v1714_v15 }
  0xb0   : > { %1012 = vmatprep.subr.bf16.mxu1 %v1397_v4 }
  0xb1   : > { %987 = vmatpush3.bf16.msra.mxu0 %v1722_v17 }
  0xb2   : > { %988 = vmatprep.subr.bf16.mxu0 %v1397_v4 }
  0xb3   : > { %1013 = vmatpush3.bf16.msra.mxu1 %v1722_v17 }
  0xb4   : > { %1014 = vmatprep.subr.bf16.mxu1 %v1397_v4 }
  0xb5   : > { %989 = vmatpush3.bf16.msra.mxu0 %v1728_v18 }
  0xb6   : > { %990 = vmatprep.subr.bf16.mxu0 %v1397_v4 }
  0xb7   : > { %1015 = vmatpush3.bf16.msra.mxu1 %v1728_v18 }
  0xb8   : > { %1016 = vmatprep.subr.bf16.mxu1 %v1397_v4 }
  0xb9   : > { %991 = vmatpush3.bf16.msra.mxu0 %v1734_v19 }
  0xba   : > { %992 = vmatprep.subr.bf16.mxu0 %v1397_v4 }
  0xbb   : > { %1017 = vmatpush3.bf16.msra.mxu1 %v1734_v19 }
  0xbc   : > { %1018 = vmatprep.subr.bf16.mxu1 %v1397_v4 }
  0xbd   : > { %993 = vmatpush3.bf16.msra.mxu0 %v1740_v21 }
  0xbe   : > { %1024 = vmatprep.subr.bf16.mxu0 %v1397_v4 }
  0xbf   : > { %1019 = vmatpush3.bf16.msra.mxu1 %v1740_v21 }
  0xc0   : > { %995 = vmatmul.mubr.bf16.vlgmr.msra.gmra.mrb[0].mxu0 %v359_v22  ;;  %1050 = vmatprep.subr.bf16.mxu1 %v1397_v4 }
  0xc1   : > { %1025 = vmatpush3.bf16.msra.mxu0 %v1674_v2  ;;  %1026 = vmatprep.mubr.msk.bf16.mxu0 %vm1398_vm0, %v1397_v4 }
  0xc2   : > { %1030 = vmatprep.subr.bf16.mxu0 %v1397_v4 }
  0xc8   : > { %1027 = vmatmul.mubr.msk.bf16.vlgmr.msra.gmra.mrb[4].mxu0 %vm362_vm1, %v551_v24 }
  0xc9   : > { %1031 = vmatpush3.bf16.msra.mxu0 %v1683_v6  ;;  %1046 = vmatprep.mubr.msk.bf16.mxu0 %vm1398_vm0, %v1397_v4 }
  0xca   : > { %1032 = vmatprep.subr.bf16.mxu0 %v1397_v4 }
  0xcd   : > { %1033 = vmatpush3.bf16.msra.mxu0 %v1695_v10 }
  0xce   : > { %1034 = vmatprep.subr.bf16.mxu0 %v1397_v4 }
  0xd1   : > { %1035 = vmatpush3.bf16.msra.mxu0 %v1706_v12 }
  0xd2   : > { %1036 = vmatprep.subr.bf16.mxu0 %v1397_v4 }
  0xd5   : > { %1037 = vmatpush3.bf16.msra.mxu0 %v1714_v15 }
  0xd6   : > { %1038 = vmatprep.subr.bf16.mxu0 %v1397_v4 }
  0xd9   : > { %1039 = vmatpush3.bf16.msra.mxu0 %v1722_v17 }
  0xda   : > { %1040 = vmatprep.subr.bf16.mxu0 %v1397_v4 }
  0xdd   : > { %1041 = vmatpush3.bf16.msra.mxu0 %v1728_v18 }
  0xde   : > { %1042 = vmatprep.subr.bf16.mxu0 %v1397_v4 }
  0xe1   : > { %1043 = vmatpush3.bf16.msra.mxu0 %v1734_v19 }
  0xe2   : > { %1044 = vmatprep.subr.bf16.mxu0 %v1397_v4 }
  0xe5   : > { %1045 = vmatpush3.bf16.msra.mxu0 %v1740_v21 }
 0x193   : > { %v440_v28 = vpop.f32.mrb[0].mxu0 }
 0x194   : > { %v449_v29 = vsel %vm448_vm3, %v351_v26, %v440_v28  ;;  %v996_v30 = vpop.f32.mrb[1].mxu0 }
 0x195   : > { %450 = vst [vmem:[%s1656_s16] sm:$0xff] %v449_v29  ;;  %v453_v31 = vsel %vm354_vm2, %v906_v27, %v449_v29  ;;  %v443_v32 = vpop.f32.mrb[2].mxu0 }
 0x196   : > { %1179 = vtanh.f32 %v453_v31  ;;  %v997_v33 = vpop.f32.mrb[3].mxu0 }
 0x1a0   : > { %v1180_v34 = vpop.eup %1179 }
 0x1a1   : > { %v455_v35 = vpack.c.bf16 %v1180_v34, %v1180_v34 }
 0x1a3   : > { %1021 = vmatmul.mubr.bf16.vlgmr.msra.gmra.mrb[0].mxu1 %v455_v35 }
 0x1a4   : > { %1051 = vmatpush3.bf16.msra.mxu1 %v1674_v2  ;;  %1052 = vmatprep.mubr.msk.bf16.mxu1 %vm1398_vm0, %v1397_v4 }
 0x1a5   : > { %1056 = vmatprep.subr.bf16.mxu1 %v1397_v4 }
 0x1ab   : > { %1053 = vmatmul.mubr.msk.bf16.vlgmr.msra.gmra.mrb[4].mxu1 %vm362_vm1, %v644_v37 }
 0x1ac   : > { %1057 = vmatpush3.bf16.msra.mxu1 %v1683_v6  ;;  %1072 = vmatprep.mubr.msk.bf16.mxu1 %vm1398_vm0, %v1397_v4 }
 0x1ad   : > { %1058 = vmatprep.subr.bf16.mxu1 %v1397_v4 }
 0x1b0   : > { %1059 = vmatpush3.bf16.msra.mxu1 %v1695_v10 }
 0x1b1   : > { %1060 = vmatprep.subr.bf16.mxu1 %v1397_v4 }
 0x1b4   : > { %1061 = vmatpush3.bf16.msra.mxu1 %v1706_v12 }
 0x1b5   : > { %1062 = vmatprep.subr.bf16.mxu1 %v1397_v4 }
 0x1b8   : > { %1063 = vmatpush3.bf16.msra.mxu1 %v1714_v15 }
 0x1b9   : > { %1064 = vmatprep.subr.bf16.mxu1 %v1397_v4 }
 0x1bc   : > { %1065 = vmatpush3.bf16.msra.mxu1 %v1722_v17 }
 0x1bd   : > { %1066 = vmatprep.subr.bf16.mxu1 %v1397_v4 }
 0x1c0   : > { %1067 = vmatpush3.bf16.msra.mxu1 %v1728_v18 }
 0x1c1   : > { %1068 = vmatprep.subr.bf16.mxu1 %v1397_v4 }
 0x1c4   : > { %1069 = vmatpush3.bf16.msra.mxu1 %v1734_v19 }
 0x1c5   : > { %1070 = vmatprep.subr.bf16.mxu1 %v1397_v4 }
 0x1c8   : > { %1071 = vmatpush3.bf16.msra.mxu1 %v1740_v21 }
 0x276   : > { %v536_v39 = vpop.f32.mrb[0].mxu1 }
 0x277   : > { %909 = vst [vmem:[%s1656_s16 + $0x8] sm:$0xff] %v536_v39  ;;  %v546_v40 = vsel %vm354_vm2, %v910_v38, %v536_v39  ;;  %v1022_v41 = vpop.f32.mrb[1].mxu1 }
 0x278   : > { %1181 = vtanh.f32 %v546_v40  ;;  %v539_v42 = vpop.f32.mrb[2].mxu1 }
 0x279   : > { %v1023_v43 = vpop.f32.mrb[3].mxu1 }
 0x282   : > { %v1182_v44 = vpop.eup %1181 }
 0x283   : > { %v548_v45 = vpack.c.bf16 %v1182_v44, %v1182_v44 }
 0x285   : > { %1047 = vmatmul.mubr.bf16.vlgmr.msra.gmra.mrb[4].mxu0 %v548_v45 }
 0x358   : > { %v629_v47 = vpop.f32.mrb[4].mxu0 }
 0x359   : > { %913 = vst [vmem:[%s1656_s16 + $0x10] sm:$0xff] %v629_v47  ;;  %v639_v48 = vsel %vm354_vm2, %v914_v46, %v629_v47  ;;  %v1048_v49 = vpop.f32.mrb[5].mxu0 }
 0x35a   : > { %1183 = vtanh.f32 %v639_v48  ;;  %v632_v50 = vpop.f32.mrb[6].mxu0 }
 0x35b   : > { %v1049_v51 = vpop.f32.mrb[7].mxu0 }
 0x364   : > { %v1184_v52 = vpop.eup %1183 }
 0x365   : > { %v641_v53 = vpack.c.bf16 %v1184_v52, %v1184_v52 }
 0x367   : > { %1073 = vmatmul.mubr.bf16.vlgmr.msra.gmra.mrb[4].mxu1 %v641_v53 }
 0x43a   : > { %v722_v54 = vpop.f32.mrb[4].mxu1 }
 0x43b   : > { %917 = vst [vmem:[%s1656_s16 + $0x18] sm:$0xff] %v722_v54  ;;  %730 = vst [vmem:[#allocation4] sm:$0xff] %v722_v54  ;;  %v1074_v55 = vpop.f32.mrb[5].mxu1 }
 0x43c   : > { %v725_v56 = vpop.f32.mrb[6].mxu1 }
 0x43d   : > { %1308 = shalt.err (!%p1305_p13)
}
 0x43e   : > { %s1309_s16 = scalar_lea.hbm %s1813_s15, 512  ;;  %s1313_s13 = scalar_lea.hbm %s1870_s5, 1024 }
 0x43f   : > { %p1310_p2 = scmp.ne.s32.totalorder %s1813_s15, %s1309_s16  ;;  %p1314_p5 = scmp.lt.u32.totalorder %s1813_s15, %s1870_s5 }
 0x440   : > { %p1315_p11 = scmp.lt.u32.totalorder %s1313_s13, %s1309_s16  ;;  %p1317_p12 = scmp.lt.u32.totalorder %s1309_s16, %s1813_s15 }
 0x441   : > { %p1311_p6 = pnand %p1310_p2, %p1900_p10 }
 0x442   : > { %p1316_p1 = por %p1315_p11, %p1314_p5 }
 0x443   : > { %p1312_p4 = pneg %p1311_p6 }
 0x444   : > { %p1318_p9 = por %p1317_p12, %p1316_p1 }
 0x446   : > { %p1319_p0 = pnand %p1318_p9, %p1312_p4 }
 0x448   : > { %1322 = shalt.err (!%p1319_p0)
}
 0x449   : > { %s1400_s12 = smov 128   ;;  %s1401_s9 = smov 8   ;;  %v1075_v57 = vpop.f32.mrb[7].mxu1 }
 0x44a   : > { %1100 = dma.vmem_to_hbm [thread:$0]  (%p1900_p10), %s1815_s10, 512, %s1813_s15, %s732_s28, %s1400_s12, %s1400_s12, %s1401_s9  }
 0x44b PF: > { %s761_s6 = sand.u32 1, %s1369_s18   ;;  %p1901_p3 = scmp.ne.s32.totalorder %s1883_s30, 0 }
 0x44c   : > { %p1902_p7 = scmp.ge.s32.totalorder %s1389_s23, 2  ;;  %s762_s11 = scalar_lea.sflag [#allocation8], %s761_s6 }
 0x44e   : > { %p1114_p8 = pnand %p1902_p7, %p1901_p3 }
 0x450   : > { %1364 = dma.done.wait (!%p1114_p8), %s762_s11, 512  }
 0x451   : > { %1366 = vsyncadd (!%p1114_p8), %s762_s11, 4294966784  ;;  %s24_s23 = sadd.s32 1, %s1389_s23   ;;  %s1903_s29 = sld [smem:[#allocation25_spill]] }
 0x452   : > { %p21_p13 = scmp.ge.s32.totalorder %s24_s23, 4   ;;  %s1904_s14 = sld [smem:[#allocation24_spill]] }
 0x453   : > { %s1905_s18 = smov %s1373_s19  ;;  %s1906_s19 = smov %s1377_s20 }
 0x454   : > { %s1908_s21 = smov %s1385_s22  ;;  %23 = sbr.rel (!%p21_p13) target bundleno = 11 (0xb), region = 156 }
 0x457   : > { %s1907_s20 = smov %s1903_s29 }
 0x458   : > { %s1909_s22 = smov %s1904_s14 }
 0x45b   :  { %767 = vsyncpa [#allocation7], 1 }
 0x45c   :  { %769 = vsyncpa [#allocation7 + $0x1], 1 }
 0x45d   :  { %770 = vsyncpa [#allocation10], 1 }
 0x45e   :  { %772 = vsyncpa [#allocation10 + $0x1], 1 }
 0x45f   :  { %773 = vsyncpa [#allocation8], 1 }
 0x460   :  { %775 = vsyncpa [#allocation8 + $0x1], 1 }
 0x461   :  { %776 = vsyncmov [#allocation5] }
 0x464   :  { %s777_s30 = vpop.sfrf %776 }
 0x465   :  { %p923_p10 = scmp.ne.s32.totalorder %s777_s30, 0 }
 0x467   :  { %781 = shalt.err (%p923_p10)  }
 0x468   :  { %783 = vsyncmov [#allocation5 + $0x1] }
 0x46b   :  { %s784_s10 = vpop.sfrf %783 }
 0x46c   :  { %p924_p2 = scmp.ne.s32.totalorder %s784_s10, 0 }
 0x46e   :  { %788 = shalt.err (%p924_p2)  }

</bundles_post_ra>
